<compile_context>
chip_gen: v7x
topology: tpu7x:2x2x1
jax: 0.10.0
libtpu: 0.0.40
codegen_flags: <defaults>
</compile_context>

<pallas_src>
import functools

import jax
import jax.numpy as jnp
from jax.experimental import pallas as pl
from jax.experimental.pallas import tpu as pltpu

_LANES = 128


@functools.lru_cache(maxsize=None)
def _tpu_config():
    """Returns (cores to shard the leading grid axis over, tile rows)."""
    kind = ""
    try:
        kind = jax.devices()[0].device_kind.lower()
    except Exception:
        pass
    if "v7" in kind or "7x" in kind:
        # 2 TCs/chip, ~3.2 TB/s HBM: bigger tiles amortize per-step overhead.
        # 4096x128 f32 = 2 MiB/input/step -> 8 MiB of double-buffered inputs.
        return 2, 4096
    if "v6" in kind:
        return 1, 2048      # 4 MiB of input buffers, fits 32 MiB scoped VMEM
    return 1, 1024          # v5e (16 MiB default scoped VMEM) and fallback


def _masked_inv_l1_kernel(t_ref, p_ref, sum_ref, cnt_ref, sum_acc, cnt_acc,
                          *, tile_rows, total_rows, steps_per_core,
                          num_row_blocks, needs_mask):
    """Per-core accumulation of sum(|1/t - 1/p| * (t>0)) and sum(t>0)."""
    c = pl.program_id(0)          # core / parallel axis
    s = pl.program_id(1)          # streaming / arbitrary axis

    @pl.when(s == 0)
    def _():
        sum_acc[...] = jnp.zeros_like(sum_acc)
        cnt_acc[...] = jnp.zeros_like(cnt_acc)

    # Cast in VMEM (free VPU work); bf16/f16 inputs stream at 2 bytes/elem.
    t = t_ref[...].astype(jnp.float32)
    p = p_ref[...].astype(jnp.float32)

    def _accumulate(valid):
        # |1/t - 1/p| == |(p - t) / (t * p)| -> one (exact) reciprocal/elem.
        # Invalid entries may produce inf/nan; jnp.where selects 0 there.
        diff = jnp.abs((p - t) * pl.reciprocal(t * p))
        diff = jnp.where(valid, diff, jnp.float32(0.0))
        # Per-step partial reduce into a tiny (1,128) accumulator: reduction
        # over axis 0 is vreg-wise VALU adds + one sublane fold per step, so
        # the hot loop carries no accumulator load/store per vreg.
        sum_acc[...] += jnp.sum(diff, axis=0, keepdims=True)
        cnt_acc[...] += jnp.sum(valid.astype(jnp.float32), axis=0,
                                keepdims=True)

    if needs_mask:
        block_lin = c * steps_per_core + s
        is_edge = block_lin >= (num_row_blocks - 1)

        # Fast path: full interior block, only the (t > 0) validity test.
        @pl.when(jnp.logical_not(is_edge))
        def _():
            _accumulate(t > 0.0)

        # Edge path: partial last block and clamped duplicate re-reads are
        # excluded by the row mask (load-bearing — do not remove).
        @pl.when(is_edge)
        def _():
            row0 = block_lin * tile_rows
            rows = jax.lax.broadcasted_iota(
                jnp.int32, (tile_rows, _LANES), 0) + row0
            _accumulate((t > 0.0) & (rows < total_rows))
    else:
        # Statically known: every block is full and never duplicated.
        _accumulate(t > 0.0)

    # Single epilogue reduction per core.
    @pl.when(s == pl.num_programs(1) - 1)
    def _():
        sum_ref[0, 0] = jnp.sum(sum_acc[...])
        cnt_ref[0, 0] = jnp.sum(cnt_acc[...])


def _lane_rows_and_tail(x):
    """Split a contiguous array into a free (rows,128) view plus a tiny tail.

    The lane-aligned prefix reshapes for free (no pad copy).  When the element
    count is not a multiple of 128, the <=127-element tail is returned
    separately and folded into the sums with plain jnp in the wrapper.
    """
    flat = x.reshape(-1)
    n = flat.shape[0]
    rem = n % _LANES
    if rem == 0:
        return flat.reshape(-1, _LANES), None
    # TODO(synk): the prefix slice below still costs one XLA copy for
    # lane-ragged element counts; only the tail is computed outside the kernel.
    return flat[: n - rem].reshape(-1, _LANES), flat[n - rem:]


def _masked_inv_l1_sums_impl(depth_prediction, depth_target):
    ncores, tile_rows = _tpu_config()

    t2d, t_tail = _lane_rows_and_tail(depth_target)
    p2d, p_tail = _lane_rows_and_tail(depth_prediction)
    total_rows = t2d.shape[0]

    if total_rows > 0:
        num_row_blocks = pl.cdiv(total_rows, tile_rows)
        steps_per_core = pl.cdiv(num_row_blocks, ncores)
        needs_mask = (total_rows % tile_rows != 0) or (
            ncores * steps_per_core != num_row_blocks)

        if ncores == 1:
            def in_map(c, s):
                return (s, 0)
        else:
            def in_map(c, s):
                # Clamp so extra steps (blocks not splitting evenly across
                # cores) re-read the last block; masked out in-kernel.
                return (jnp.minimum(c * steps_per_core + s,
                                    num_row_blocks - 1), 0)

        kernel = functools.partial(
            _masked_inv_l1_kernel,
            tile_rows=tile_rows,
            total_rows=total_rows,
            steps_per_core=steps_per_core,
            num_row_blocks=num_row_blocks,
            needs_mask=needs_mask,
        )

        if ncores > 1:
            core_sem = getattr(pltpu, "CORE_PARALLEL", pltpu.PARALLEL)
            dim_sems = (core_sem, pltpu.ARBITRARY)
        else:
            dim_sems = (pltpu.ARBITRARY, pltpu.ARBITRARY)

        n_elems = total_rows * _LANES
        bytes_in = (t2d.size * t2d.dtype.itemsize
                    + p2d.size * p2d.dtype.itemsize)

        sums, cnts = pl.pallas_call(
            kernel,
            out_shape=(
                jax.ShapeDtypeStruct((ncores, 1), jnp.float32),
                jax.ShapeDtypeStruct((ncores, 1), jnp.float32),
            ),
            grid_spec=pltpu.PrefetchScalarGridSpec(
                num_scalar_prefetch=0,
                grid=(ncores, steps_per_core),
                in_specs=[
                    pl.BlockSpec((tile_rows, _LANES), in_map),
                    pl.BlockSpec((tile_rows, _LANES), in_map),
                ],
                out_specs=[
                    pl.BlockSpec((1, 1), lambda c, s: (c, 0),
                                 memory_space=pltpu.SMEM),
                    pl.BlockSpec((1, 1), lambda c, s: (c, 0),
                                 memory_space=pltpu.SMEM),
                ],
                scratch_shapes=[
                    pltpu.VMEM((1, _LANES), jnp.float32),
                    pltpu.VMEM((1, _LANES), jnp.float32),
                ],
            ),
            compiler_params=pltpu.CompilerParams(
                dimension_semantics=dim_sems,
            ),
            cost_estimate=pl.CostEstimate(
                flops=7 * n_elems,
                transcendentals=n_elems,
                bytes_accessed=bytes_in + 8 * ncores,
            ),
        )(t2d, p2d)

        diff_sum = jnp.sum(sums)
        num_valid = jnp.sum(cnts)
    else:
        diff_sum = jnp.float32(0.0)
        num_valid = jnp.float32(0.0)

    # Fold the lane-ragged (<=127 element) tail in with plain jnp.
    if t_tail is not None:
        t_t = t_tail.astype(jnp.float32)
        p_t = p_tail.astype(jnp.float32)
        valid_t = t_t > 0.0
        tail_diff = jnp.where(valid_t, jnp.abs(1.0 / t_t - 1.0 / p_t), 0.0)
        diff_sum = diff_sum + jnp.sum(tail_diff)
        num_valid = num_valid + jnp.sum(valid_t.astype(jnp.float32))

    return diff_sum, num_valid


_masked_inv_l1_sums = jax.jit(_masked_inv_l1_sums_impl)


class InvertedMaskedL1Loss:
    """JAX/Pallas port of the PyTorch InvertedMaskedL1Loss module."""

    def __init__(self, check_valid=False):
        # check_valid=True reproduces the PyTorch `num_valids > 100` assert,
        # at the cost of one blocking device->host sync per call.
        self.loss = None
        self._check_valid = check_valid

    def __call__(self, depth_input, depth_prediction, depth_target, epoch=None):
        assert depth_prediction.ndim == depth_target.ndim, "inconsistent dimensions"
        # depth_input is unused by the reference module's forward.
        diff_sum, num_valids = _masked_inv_l1_sums(depth_prediction, depth_target)
        if self._check_valid:
            assert float(jax.device_get(num_valids)) > 100, (
                "training image has less than 100 valid pixels")
        final_loss = diff_sum / num_valids
        # Keep device arrays (no .item()) so training steps don't stall on
        # device->host transfers.
        self.loss = [final_loss, 0, 0]
        return final_loss


def _reference(depth_prediction, depth_target):
    valid = depth_target > 0
    diff = jnp.abs(1.0 / depth_target - 1.0 / depth_prediction)
    diff = jnp.where(valid, diff, 0.0)
    return jnp.sum(diff) / jnp.sum(valid.astype(jnp.float32))


if __name__ == "__main__":
    key = jax.random.PRNGKey(0)
    k1, k2, k3, k4 = jax.random.split(key, 4)

    B, C, H, W = 2, 1, 16, 16  # depth maps: single-channel NCHW

    depth_input = jax.random.uniform(k1, (B, C, H, W), jnp.float32, 0.5, 10.0)
    depth_prediction = jax.random.uniform(k2, (B, C, H, W), jnp.float32, 0.5, 10.0)
    depth_target = jax.random.uniform(k3, (B, C, H, W), jnp.float32, 0.5, 10.0)
    # Knock out ~25% of target pixels (<=0 -> invalid), keeping > 100 valid.
    drop = jax.random.uniform(k4, (B, C, H, W)) < 0.25
    depth_target = jnp.where(drop, 0.0, depth_target)

    loss_mod = InvertedMaskedL1Loss(check_valid=True)
    out = jax.block_until_ready(loss_mod(depth_input, depth_prediction, depth_target))

    ref = jax.block_until_ready(_reference(depth_prediction, depth_target))
    assert jnp.allclose(out, ref, rtol=1e-5, atol=1e-6), (out, ref)

    print("KERNEL_OK")
</pallas_src>

<mosaic_0001>
module attributes {stable_mosaic.version = 11 : i64} {
  func.func @_masked_inv_l1_kernel(%arg0: i32, %arg1: i32, %arg2: memref<1024x128xf32, #tpu.memory_space<vmem>>, %arg3: memref<1024x128xf32, #tpu.memory_space<vmem>>, %arg4: memref<1x1xf32, #tpu.memory_space<smem>>, %arg5: memref<1x1xf32, #tpu.memory_space<smem>>, %arg6: memref<1x128xf32, #tpu.memory_space<vmem>>, %arg7: memref<1x128xf32, #tpu.memory_space<vmem>>) attributes {dimension_semantics = [#tpu.dimension_semantics<arbitrary>, #tpu.dimension_semantics<arbitrary>], iteration_bounds = array<i64: 1, 1>, scalar_prefetch = 0 : i64, scratch_operands = 2 : i64, tpu.core_type = #tpu.core_type<tc>, window_params = [{transform_indices = @transform_0, window_bounds = array<i64: 1024, 128>}, {transform_indices = @transform_1, window_bounds = array<i64: 1024, 128>}, {transform_indices = @transform_2, window_bounds = array<i64: 1, 1>}, {transform_indices = @transform_3, window_bounds = array<i64: 1, 1>}]} {
    %c0_i32 = arith.constant 0 : i32
    %0 = arith.cmpi eq, %arg1, %c0_i32 : i32
    %1 = arith.extui %0 : i1 to i32
    %c0_i32_0 = arith.constant 0 : i32
    %2 = arith.cmpi ne, %1, %c0_i32_0 : i32
    scf.if %2 {
      %cst = arith.constant 0.000000e+00 : f32
      %16 = vector.broadcast %cst : f32 to vector<1x128xf32>
      %c0_9 = arith.constant 0 : index
      %c0_10 = arith.constant 0 : index
      %17 = vector.load %arg6[%c0_9, %c0_10] : memref<1x128xf32, #tpu.memory_space<vmem>>, vector<1x128xf32>
      tpu.vector_store %arg6[%c0_9, %c0_10], %16 {strides = array<i32>} : memref<1x128xf32, #tpu.memory_space<vmem>>, vector<1x128xf32>,
      %cst_11 = arith.constant 0.000000e+00 : f32
      %18 = vector.broadcast %cst_11 : f32 to vector<1x128xf32>
      %c0_12 = arith.constant 0 : index
      %c0_13 = arith.constant 0 : index
      %19 = vector.load %arg7[%c0_12, %c0_13] : memref<1x128xf32, #tpu.memory_space<vmem>>, vector<1x128xf32>
      tpu.vector_store %arg7[%c0_12, %c0_13], %18 {strides = array<i32>} : memref<1x128xf32, #tpu.memory_space<vmem>>, vector<1x128xf32>,
    } else {
    }
    %c0 = arith.constant 0 : index
    %c0_1 = arith.constant 0 : index
    %3 = vector.load %arg2[%c0, %c0_1] : memref<1024x128xf32, #tpu.memory_space<vmem>>, vector<1024x128xf32>
    %c0_2 = arith.constant 0 : index
    %c0_3 = arith.constant 0 : index
    %4 = vector.load %arg3[%c0_2, %c0_3] : memref<1024x128xf32, #tpu.memory_space<vmem>>, vector<1024x128xf32>
    %c1_i32 = arith.constant 1 : i32
    %5 = arith.muli %arg0, %c1_i32 : i32
    %6 = arith.addi %5, %arg1 : i32
    %c0_i32_4 = arith.constant 0 : i32
    %7 = arith.cmpi sge, %6, %c0_i32_4 : i32
    %true = arith.constant true
    %8 = arith.xori %7, %true : i1
    %9 = arith.extui %8 : i1 to i32
    %c0_i32_5 = arith.constant 0 : i32
    %10 = arith.cmpi ne, %9, %c0_i32_5 : i32
    scf.if %10 {
      %cst = arith.constant 0.000000e+00 : f32
      %16 = vector.broadcast %cst : f32 to vector<1024x128xf32>
      %17 = arith.cmpf ogt, %3, %16 : vector<1024x128xf32>
      %18 = arith.subf %4, %3 : vector<1024x128xf32>
      %19 = arith.mulf %3, %4 : vector<1024x128xf32>
      %20 = tpu.reciprocal %19 : vector<1024x128xf32> -> vector<1024x128xf32>
      %21 = arith.mulf %18, %20 : vector<1024x128xf32>
      %22 = math.absf %21 : vector<1024x128xf32>
      %cst_9 = arith.constant 0.000000e+00 : f32
      %23 = vector.broadcast %cst_9 : f32 to vector<1024x128xf32>
      %24 = arith.select %17, %22, %23 : vector<1024x128xi1>, vector<1024x128xf32>
      %c0_10 = arith.constant 0 : index
      %c0_11 = arith.constant 0 : index
      %25 = vector.load %arg6[%c0_10, %c0_11] : memref<1x128xf32, #tpu.memory_space<vmem>>, vector<1x128xf32>
      %cst_12 = arith.constant dense<0.000000e+00> : vector<128xf32>
      %26 = vector.multi_reduction <add>, %24, %cst_12 [0] : vector<1024x128xf32> to vector<128xf32>
      %27 = vector.shape_cast %26 : vector<128xf32> to vector<1x128xf32>
      %28 = arith.addf %25, %27 : vector<1x128xf32>
      %c0_13 = arith.constant 0 : index
      %c0_14 = arith.constant 0 : index
      %29 = vector.load %arg6[%c0_13, %c0_14] : memref<1x128xf32, #tpu.memory_space<vmem>>, vector<1x128xf32>
      tpu.vector_store %arg6[%c0_13, %c0_14], %28 {strides = array<i32>} : memref<1x128xf32, #tpu.memory_space<vmem>>, vector<1x128xf32>,
      %c0_15 = arith.constant 0 : index
      %c0_16 = arith.constant 0 : index
      %30 = vector.load %arg7[%c0_15, %c0_16] : memref<1x128xf32, #tpu.memory_space<vmem>>, vector<1x128xf32>
      %31 = arith.extui %17 : vector<1024x128xi1> to vector<1024x128xi32>
      %32 = arith.sitofp %31 : vector<1024x128xi32> to vector<1024x128xf32>
      %cst_17 = arith.constant dense<0.000000e+00> : vector<128xf32>
      %33 = vector.multi_reduction <add>, %32, %cst_17 [0] : vector<1024x128xf32> to vector<128xf32>
      %34 = vector.shape_cast %33 : vector<128xf32> to vector<1x128xf32>
      %35 = arith.addf %30, %34 : vector<1x128xf32>
      %c0_18 = arith.constant 0 : index
      %c0_19 = arith.constant 0 : index
      %36 = vector.load %arg7[%c0_18, %c0_19] : memref<1x128xf32, #tpu.memory_space<vmem>>, vector<1x128xf32>
      tpu.vector_store %arg7[%c0_18, %c0_19], %35 {strides = array<i32>} : memref<1x128xf32, #tpu.memory_space<vmem>>, vector<1x128xf32>,
    } else {
    }
    %11 = arith.extui %7 : i1 to i32
    %c0_i32_6 = arith.constant 0 : i32
    %12 = arith.cmpi ne, %11, %c0_i32_6 : i32
    scf.if %12 {
      %c1024_i32 = arith.constant 1024 : i32
      %16 = arith.muli %6, %c1024_i32 : i32
      %17 = tpu.iota {dimensions = array<i32: 0>} : vector<1024x128xi32>
      %18 = vector.broadcast %16 : i32 to vector<1024x128xi32>
      %19 = arith.addi %17, %18 : vector<1024x128xi32>
      %cst = arith.constant 0.000000e+00 : f32
      %20 = vector.broadcast %cst : f32 to vector<1024x128xf32>
      %21 = arith.cmpf ogt, %3, %20 : vector<1024x128xf32>
      %c4_i32 = arith.constant 4 : i32
      %22 = vector.broadcast %c4_i32 : i32 to vector<1024x128xi32>
      %23 = arith.cmpi slt, %19, %22 : vector<1024x128xi32>
      %24 = arith.andi %21, %23 : vector<1024x128xi1>
      %25 = arith.subf %4, %3 : vector<1024x128xf32>
      %26 = arith.mulf %3, %4 : vector<1024x128xf32>
      %27 = tpu.reciprocal %26 : vector<1024x128xf32> -> vector<1024x128xf32>
      %28 = arith.mulf %25, %27 : vector<1024x128xf32>
      %29 = math.absf %28 : vector<1024x128xf32>
      %cst_9 = arith.constant 0.000000e+00 : f32
      %30 = vector.broadcast %cst_9 : f32 to vector<1024x128xf32>
      %31 = arith.select %24, %29, %30 : vector<1024x128xi1>, vector<1024x128xf32>
      %c0_10 = arith.constant 0 : index
      %c0_11 = arith.constant 0 : index
      %32 = vector.load %arg6[%c0_10, %c0_11] : memref<1x128xf32, #tpu.memory_space<vmem>>, vector<1x128xf32>
      %cst_12 = arith.constant dense<0.000000e+00> : vector<128xf32>
      %33 = vector.multi_reduction <add>, %31, %cst_12 [0] : vector<1024x128xf32> to vector<128xf32>
      %34 = vector.shape_cast %33 : vector<128xf32> to vector<1x128xf32>
      %35 = arith.addf %32, %34 : vector<1x128xf32>
      %c0_13 = arith.constant 0 : index
      %c0_14 = arith.constant 0 : index
      %36 = vector.load %arg6[%c0_13, %c0_14] : memref<1x128xf32, #tpu.memory_space<vmem>>, vector<1x128xf32>
      tpu.vector_store %arg6[%c0_13, %c0_14], %35 {strides = array<i32>} : memref<1x128xf32, #tpu.memory_space<vmem>>, vector<1x128xf32>,
      %c0_15 = arith.constant 0 : index
      %c0_16 = arith.constant 0 : index
      %37 = vector.load %arg7[%c0_15, %c0_16] : memref<1x128xf32, #tpu.memory_space<vmem>>, vector<1x128xf32>
      %38 = arith.extui %24 : vector<1024x128xi1> to vector<1024x128xi32>
      %39 = arith.sitofp %38 : vector<1024x128xi32> to vector<1024x128xf32>
      %cst_17 = arith.constant dense<0.000000e+00> : vector<128xf32>
      %40 = vector.multi_reduction <add>, %39, %cst_17 [0] : vector<1024x128xf32> to vector<128xf32>
      %41 = vector.shape_cast %40 : vector<128xf32> to vector<1x128xf32>
      %42 = arith.addf %37, %41 : vector<1x128xf32>
      %c0_18 = arith.constant 0 : index
      %c0_19 = arith.constant 0 : index
      %43 = vector.load %arg7[%c0_18, %c0_19] : memref<1x128xf32, #tpu.memory_space<vmem>>, vector<1x128xf32>
      tpu.vector_store %arg7[%c0_18, %c0_19], %42 {strides = array<i32>} : memref<1x128xf32, #tpu.memory_space<vmem>>, vector<1x128xf32>,
    } else {
    }
    %c0_i32_7 = arith.constant 0 : i32
    %13 = arith.cmpi eq, %arg1, %c0_i32_7 : i32
    %14 = arith.extui %13 : i1 to i32
    %c0_i32_8 = arith.constant 0 : i32
    %15 = arith.cmpi ne, %14, %c0_i32_8 : i32
    scf.if %15 {
      %c0_9 = arith.constant 0 : index
      %c0_10 = arith.constant 0 : index
      %16 = vector.load %arg6[%c0_9, %c0_10] : memref<1x128xf32, #tpu.memory_space<vmem>>, vector<1x128xf32>
      %17 = vector.shape_cast %16 : vector<1x128xf32> to vector<1x1x128xf32>
      %cst = arith.constant dense<0.000000e+00> : vector<1xf32>
      %18 = vector.multi_reduction <add>, %17, %cst [1, 2] : vector<1x1x128xf32> to vector<1xf32>
      %19 = vector.shape_cast %18 : vector<1xf32> to vector<1x1x1xf32>
      %20 = vector.extract %19[0, 0, 0] : f32 from vector<1x1x1xf32>
      %c0_11 = arith.constant 0 : index
      %c0_12 = arith.constant 0 : index
      %21 = memref.load %arg4[%c0_11, %c0_12] : memref<1x1xf32, #tpu.memory_space<smem>>
      memref.store %20, %arg4[%c0_11, %c0_12] : memref<1x1xf32, #tpu.memory_space<smem>>
      %c0_13 = arith.constant 0 : index
      %c0_14 = arith.constant 0 : index
      %22 = vector.load %arg7[%c0_13, %c0_14] : memref<1x128xf32, #tpu.memory_space<vmem>>, vector<1x128xf32>
      %23 = vector.shape_cast %22 : vector<1x128xf32> to vector<1x1x128xf32>
      %cst_15 = arith.constant dense<0.000000e+00> : vector<1xf32>
      %24 = vector.multi_reduction <add>, %23, %cst_15 [1, 2] : vector<1x1x128xf32> to vector<1xf32>
      %25 = vector.shape_cast %24 : vector<1xf32> to vector<1x1x1xf32>
      %26 = vector.extract %25[0, 0, 0] : f32 from vector<1x1x1xf32>
      %c0_16 = arith.constant 0 : index
      %c0_17 = arith.constant 0 : index
      %27 = memref.load %arg5[%c0_16, %c0_17] : memref<1x1xf32, #tpu.memory_space<smem>>
      memref.store %26, %arg5[%c0_16, %c0_17] : memref<1x1xf32, #tpu.memory_space<smem>>
    } else {
    }
    return
  }
  func.func @transform_0(%arg0: i32, %arg1: i32) -> (i32, i32) {
    %c0_i32 = arith.constant 0 : i32
    %c0_i32_0 = arith.constant 0 : i32
    return %arg1, %c0_i32 : i32, i32
  }
  func.func @transform_1(%arg0: i32, %arg1: i32) -> (i32, i32) {
    %c0_i32 = arith.constant 0 : i32
    %c0_i32_0 = arith.constant 0 : i32
    return %arg1, %c0_i32 : i32, i32
  }
  func.func @transform_2(%arg0: i32, %arg1: i32) -> (i32, i32) {
    %c0_i32 = arith.constant 0 : i32
    %c0_i32_0 = arith.constant 0 : i32
    return %arg0, %c0_i32 : i32, i32
  }
  func.func @transform_3(%arg0: i32, %arg1: i32) -> (i32, i32) {
    %c0_i32 = arith.constant 0 : i32
    %c0_i32_0 = arith.constant 0 : i32
    return %arg0, %c0_i32 : i32, i32
  }
}

</mosaic_0001>

<bundles_post_ra>
// kernel: _masked_inv_l1_sums_impl.1
= control target key start
LH: loop header
LB: loop body
LE: loop exit
PB: predicated region body
PF: predicated region fallthrough
CT: control target
= control target key end

     0   :  { %9 = vsyncpa [#allocation5], 0  ;;  %v1711_v2 = vlaneseq  ;;  %s3919_s0 = inlined_call_operand.vmem [shape: f32[4,128], index: 0, kind: input, shape index: {}]   ;;  %s3920_s1 = inlined_call_operand.vmem [shape: f32[4,128], index: 1, kind: input, shape index: {}]   ;;  %s3921_s2 = inlined_call_operand.hbm [shape: f32[1,1], index: 2, kind: output, shape index: {0}]   ;;  %s3922_s3 = inlined_call_operand.hbm [shape: f32[1,1], index: 3, kind: output, shape index: {1}]  }
   0x1   :  { %v21_v0 = vld [vmem:[%s3919_s0] sm:$0xff] }
   0x2   :  { %v149_v1 = vld [vmem:[%s3920_s1] sm:$0xff] }
   0x3   :  { %10 = vsyncpa [#allocation7], 0  ;;  %v3866_v3 = vmov 0.0   ;;  %v2481_v4 = vmul.f32 %v149_v1, %v21_v0  ;;  %v1712_v5 = vshrl.u32 %v1711_v2, 7  ;;  %vm1969_vm0 = vcmp.gt.f32.partialorder %v21_v0, 0.0  ;;  %s3842_s17 = scalar_lea.hbm %s3921_s2, 16 }
   0x4   :  { %19 = vst [vmem:[#allocation2] sm:$0x1] %v3866_v3  ;;  %20 = vst [vmem:[#allocation3] sm:$0x1] %v3866_v3  ;;  %v2353_v9 = vsub.f32 %v149_v1, %v21_v0  ;;  %vm3653_vm3 = vcmask 1040384   ;;  %p3843_p0 = scmp.ne.s32.totalorder %s3921_s2, %s3842_s17  ;;  %p3846_p1 = scmp.lt.u32.totalorder %s3842_s17, %s3921_s2 }
   0x5   :  { %3840 = vrcp.f32 %v2481_v4  ;;  %vm2097_vm1 = vcmp.lt.s32.totalorder %v1712_v5, 4 }
   0x6   :  { %vm2225_vm2 = vmand %vm1969_vm0, %vm2097_vm1  ;;  %p3848_p2 = pnand %p3846_p1, %p3843_p0 }
   0x7   :  { %v3832_v6 = vsel %vm2225_vm2, 1.0, %v3866_v3 }
   0x8   :  { %v3641_v7 = vrot.slane %v3832_v6, 4 }
   0xa   :  { %v3642_v8 = vadd.f32 %v3832_v6, %v3641_v7 }
   0xb   :  { %v3257_v16 = vld [vmem:[#allocation3] sm:$0x1]  ;;  %v3121_v25 = vld [vmem:[#allocation2] sm:$0x1] }
   0xc   :  { %v3643_v10 = vrot.slane %v3642_v8, 2 }
   0xe   :  { %v3644_v12 = vadd.f32 %v3643_v10, %v3642_v8 }
   0xf   :  { %v3841_v11 = vpop.eup %3840 }
  0x10   :  { %v2737_v13 = vmul.f32 %v3841_v11, %v2353_v9  ;;  %v3645_v14 = vrot.slane %v3644_v12, 1 }
  0x12   :  { %v2865_v15 = vand.u32 2147483647, %v2737_v13  ;;  %v3646_v17 = vadd.f32 %v3645_v14, %v3644_v12 }
  0x14   :  { %v2993_v18 = vsel %vm2225_vm2, %v2865_v15, 0.0  ;;  %v3647_v20 = vadd.f32 %v3646_v17, %v3257_v16 }
  0x15   :  { %v3249_v19 = vrot.slane %v2993_v18, 4 }
  0x16   :  { %3648 = vst [vmem:[#allocation3] sm:$0x1] %v3647_v20 }
  0x17   :  { %v3250_v21 = vadd.f32 %v3249_v19, %v2993_v18 }
  0x19   :  { %v3251_v22 = vrot.slane %v3250_v21, 2 }
  0x1b   :  { %v3252_v23 = vadd.f32 %v3251_v22, %v3250_v21 }
  0x1d   :  { %v3253_v24 = vrot.slane %v3252_v23, 1  ;;  %v3666_v29 = vld [vmem:[#allocation3] sm:$0x1] }
  0x1e   :  { %v3667_v31 = vsel %vm3653_vm3, %v3666_v29, 0.0 }
  0x1f   :  { %v3254_v26 = vadd.f32 %v3253_v24, %v3252_v23 }
  0x21   :  { %v3255_v27 = vadd.f32 %v3254_v26, %v3121_v25 }
  0x23   :  { %3256 = vst [vmem:[#allocation2] sm:$0x1] %v3255_v27 }
  0x2a   :  { %v3652_v28 = vld [vmem:[#allocation2] sm:$0x1] }
  0x2b   :  { %v3654_v30 = vsel %vm3653_vm3, %v3652_v28, 0.0 }
  0x2c   :  { %3655 = vadd.xlane.f32.xlu0 %v3654_v30 }
  0x30   :  { %3668 = vadd.xlane.f32.xlu0 %v3667_v31 }
  0xb9   :  { %v3656_v32 = vpop.xlane.xlu0 %3655 }
  0xba   :  { %v3657_v33 = vrot.slane %v3656_v32, 4 }
  0xbc   :  { %v3658_v34 = vadd.f32 %v3657_v33, %v3656_v32 }
  0xbd   :  { %v3669_v35 = vpop.xlane.xlu0 %3668 }
  0xbe   :  { %v3659_v36 = vrot.slane %v3658_v34, 2  ;;  %v3670_v37 = vrot.slane %v3669_v35, 4 }
  0xc0   :  { %v3671_v38 = vadd.f32 %v3670_v37, %v3669_v35  ;;  %v3660_v39 = vadd.f32 %v3659_v36, %v3658_v34 }
  0xc2   :  { %v3672_v40 = vrot.slane %v3671_v38, 2  ;;  %v3661_v41 = vrot.slane %v3660_v39, 1 }
  0xc4   :  { %v3673_v42 = vadd.f32 %v3672_v40, %v3671_v38  ;;  %v3662_v43 = vadd.f32 %v3661_v41, %v3660_v39 }
  0xc6   :  { %3833 = vpush %v3662_v43  ;;  %v3674_v44 = vrot.slane %v3673_v42, 1 }
  0xc8   :  { %v3675_v45 = vadd.f32 %v3674_v44, %v3673_v42 }
  0xca   :  { %3835 = vpush %v3675_v45 }
  0xf7   :  { %s3834_s0 = spop %3833 }
  0xf8   :  { %3665 = sst [smem:[#allocation4]] %s3834_s0 }
  0xf9   :  { %3851 = shalt.err (!%p3848_p2)
}
  0xfa   :  { %s3867_s22 = smov [#allocation4]   ;;  %s3852_s28 = scalar_lea.hbm %s3922_s3, 16 }
  0xfb   :  { %3686 = dma.smem_to_hbm %s3867_s22, 16, %s3921_s2, [#allocation5]  }
  0xfc   :  { %s3836_s25 = spop %3835  ;;  %p3853_p3 = scmp.ne.s32.totalorder %s3922_s3, %s3852_s28 }
  0xfd   :  { %3678 = sst [smem:[#allocation6]] %s3836_s25  ;;  %p3856_p4 = scmp.lt.u32.totalorder %s3852_s28, %s3922_s3 }
  0xff   :  { %p3858_p5 = pnand %p3856_p4, %p3853_p3 }
 0x101   :  { %3861 = shalt.err (!%p3858_p5)
}
 0x102   :  { %s3868_s6 = smov [#allocation6]  }
 0x103   :  { %3694 = dma.smem_to_hbm %s3868_s6, 16, %s3922_s3, [#allocation7]  }
 0x104   :  { %3862 = dma.done.wait [#allocation5], 16  }
 0x105   :  { %3863 = vsyncadd [#allocation5], 4294967280 }
 0x106   :  { %3864 = dma.done.wait [#allocation7], 16  }
 0x107   :  { %3865 = vsyncadd [#allocation7], 4294967280 }
 0x108   :  { %3701 = sfence }
 0x109   :  { %3702 = vsyncpa [#allocation5], 1 }
 0x10a   :  { %3703 = vsyncpa [#allocation7], 1 }

</bundles_post_ra>
